<compile_context>
chip_gen: v7x
topology: tpu7x:2x2x1
jax: 0.10.0
libtpu: 0.0.40
codegen_flags: <defaults>
</compile_context>

<pallas_src>
import functools

import jax
import jax.numpy as jnp
from jax.experimental import pallas as pl
from jax.experimental.pallas import tpu as pltpu


def _round_up(x, m):
    return (x + m - 1) // m * m


def _sublanes(dtype):
    itemsize = jnp.dtype(dtype).itemsize
    if itemsize >= 4:
        return 8
    if itemsize == 2:
        return 16
    return 32


def _tensorcores_per_chip():
    # v7x has 2 TensorCores per chip; v5e/v6e have 1.
    try:
        kind = jax.devices()[0].device_kind.lower()
    except Exception:
        return 1
    return 2 if "v7" in kind else 1


_TARGET_BLOCK_BYTES = 4 << 20   # per-step input block target (2-6 MiB sweet spot)
_MAX_BLOCK_BYTES = 6 << 20      # hard ceiling for a single input block
_MIN_TN = 512                   # never shrink lanes below this


def _choose_tiles(B, N, dtype, n_cores):
    """Pick (tb, tn) batch/lane tiles sized by bytes, batch-split-first."""
    itemsize = jnp.dtype(dtype).itemsize
    sub = _sublanes(dtype)

    n_pad = _round_up(N, 128) if N > 128 else N
    min_tn = min(_MIN_TN, n_pad)

    rows_full = _round_up(B, sub)

    def tn_for_rows(rows):
        # Widest 128-aligned lane tile keeping rows*tn*itemsize near TARGET.
        cap = (_TARGET_BLOCK_BYTES // (rows * itemsize)) // 128 * 128
        return min(n_pad, max(cap, min_tn))

    tn = tn_for_rows(rows_full)
    if rows_full * tn * itemsize <= _MAX_BLOCK_BYTES:
        # Whole batch resident per step; lane tile sized purely by bytes
        # (can grow far past 2048 when B is small).
        tb = B
    else:
        # Large batch: split the reduction axis first, keep lanes wide.
        tn = min_tn
        rows_target = max(_TARGET_BLOCK_BYTES // (tn * itemsize), sub)
        tb = max((min(rows_target, B) // sub) * sub, sub)
        # Prefer a tb that divides B exactly so no per-step row mask is needed.
        for cand in range(tb, max(sub - 1, tb - 32 * sub), -sub):
            if B % cand == 0:
                tb = cand
                break
        tb = min(tb, B)
        tn = tn_for_rows(_round_up(tb, sub))   # re-widen lanes if tb ended small

    # Megacore (v7x only): split lanes 2-way across the two TensorCores, but
    # only if each core keeps >= 512 lanes and >= ~2 MiB of input per step.
    if n_cores == 2 and N > 128 and pl.cdiv(n_pad, tn) == 1:
        half = _round_up(pl.cdiv(n_pad, 2), 128)
        if half >= 512 and _round_up(tb, sub) * half * itemsize >= (2 << 20):
            tn = half
        # NOTE: when N is too small to split lanes, feeding the 2nd TC would
        # require a batch split across cores (leading size-2 "parallel" axis
        # producing partial sums); not implemented here.

    return tb, tn


def _freq_mean_kernel(x_ref, o_ref, idx_ref, acc_ref, *,
                      batch, tb, acc_rows, mask_rows):
    # Grid: (lane_steps, batch_steps); batch (reduction) axis is last.
    b = pl.program_id(1)

    @pl.when(b == 0)
    def _():
        acc_ref[...] = jnp.zeros_like(acc_ref)
        # torch.max over a size-1 dim -> indices identically zero; emit them
        # from the same kernel so no separate fill launch is needed.
        idx_ref[...] = jnp.zeros_like(idx_ref)

    x = x_ref[...].astype(jnp.float32)
    if mask_rows:
        # Final batch tile may be padded; zero out-of-range rows.
        row = jax.lax.broadcasted_iota(jnp.int32, x.shape, 0) + b * tb
        x = jnp.where(row < batch, x, 0.0)

    if acc_rows == 1:
        acc_ref[...] += jnp.sum(x, axis=0, keepdims=True)
    else:
        # Pure VPU adds into an (8, tn) accumulator per step; the cross-sublane
        # collapse (XLU) happens once in the finalize step.
        acc_ref[...] += jnp.sum(
            x.reshape(tb // acc_rows, acc_rows, x.shape[-1]), axis=0)

    @pl.when(b == pl.num_programs(1) - 1)
    def _():
        total = acc_ref[...]
        if acc_rows != 1:
            total = jnp.sum(total, axis=0, keepdims=True)
        # mean((x + 1) / 2) == (mean(x) + 1) * 0.5: affine applied once per
        # output element instead of once per input element.
        o_ref[...] = ((total * (1.0 / batch) + 1.0) * 0.5).astype(o_ref.dtype)


def freq_forward(inp):
    """Pallas equivalent of Freq.forward: returns (mean, indices)."""
    B, C, H, W = inp.shape
    N = C * H * W
    x2d = inp.reshape(B, N)

    itemsize = jnp.dtype(inp.dtype).itemsize
    sub = _sublanes(inp.dtype)
    n_cores = _tensorcores_per_chip()

    tb, tn = _choose_tiles(B, N, inp.dtype, n_cores)
    lane_steps = pl.cdiv(N, tn)
    batch_steps = pl.cdiv(B, tb)
    mask_rows = (B % tb) != 0
    acc_rows = 8 if (tb % 8 == 0) else 1

    # Deeper input buffering only when blocks are unavoidably small and there
    # are enough grid steps for it to hide DMA issue/setup latency.
    in_block_bytes = _round_up(tb, sub) * tn * itemsize
    if in_block_bytes < (1 << 20) and lane_steps * batch_steps >= 4:
        in_spec = pl.BlockSpec((tb, tn), lambda j, b: (b, j),
                               pipeline_mode=pl.Buffered(3))
        in_bufs = 3
    else:
        in_spec = pl.BlockSpec((tb, tn), lambda j, b: (b, j))
        in_bufs = 2

    # VMEM limit computed from the actual footprint (buffered in/out blocks
    # + accumulator) with margin; capped at 40 MiB for v7x's 64 MiB VMEM.
    out_block_bytes = sub * tn * itemsize      # (1, tn) pads to `sub` rows
    idx_block_bytes = sub * tn * 4
    acc_bytes = acc_rows * tn * 4
    footprint = (in_bufs * in_block_bytes
                 + 2 * (out_block_bytes + idx_block_bytes)
                 + acc_bytes)
    vmem_limit = int(min(max(footprint + footprint // 4 + (2 << 20), 16 << 20),
                         40 << 20))

    kernel = functools.partial(_freq_mean_kernel, batch=B, tb=tb,
                               acc_rows=acc_rows, mask_rows=mask_rows)

    out2d, idx2d = pl.pallas_call(
        kernel,
        out_shape=(jax.ShapeDtypeStruct((1, N), inp.dtype),
                   jax.ShapeDtypeStruct((1, N), jnp.int32)),
        grid_spec=pltpu.PrefetchScalarGridSpec(
            num_scalar_prefetch=0,
            grid=(lane_steps, batch_steps),
            in_specs=[in_spec],
            out_specs=[pl.BlockSpec((1, tn), lambda j, b: (0, j)),
                       pl.BlockSpec((1, tn), lambda j, b: (0, j))],
            scratch_shapes=[pltpu.VMEM((acc_rows, tn), jnp.float32)],
        ),
        compiler_params=pltpu.CompilerParams(
            dimension_semantics=("parallel", "arbitrary"),
            vmem_limit_bytes=vmem_limit,
        ),
    )(x2d)

    mean = out2d.reshape(1, C, H, W)
    # TODO(synk): torch.max returns int64 indices; values (all zero) match but
    # dtype here is int32.
    indices = idx2d.reshape(C, H, W)
    return mean, indices


if __name__ == "__main__":
    key = jax.random.PRNGKey(0)
    B, C, H, W = 2, 4, 16, 16
    x = jax.random.normal(key, (B, C, H, W), dtype=jnp.float32)

    mean, indices = freq_forward(x)
    mean = jax.block_until_ready(mean)
    indices = jax.block_until_ready(indices)

    # Reference in plain JAX (matches the PyTorch module semantics).
    ref_mean = jnp.mean((x + 1.0) / 2.0, axis=0, keepdims=True)
    ref_idx = jnp.argmax(ref_mean, axis=0)

    assert mean.shape == (1, C, H, W), mean.shape
    assert indices.shape == (C, H, W), indices.shape
    assert jnp.allclose(mean, ref_mean, atol=1e-5, rtol=1e-5), "mean mismatch"
    assert jnp.array_equal(indices, ref_idx.astype(indices.dtype)), "indices mismatch"

    print("KERNEL_OK")
</pallas_src>

<mosaic_0001>
module attributes {stable_mosaic.version = 11 : i64} {
  func.func @_freq_mean_kernel(%arg0: i32, %arg1: i32, %arg2: memref<2x1024xf32, #tpu.memory_space<vmem>>, %arg3: memref<1x1024xf32, #tpu.memory_space<vmem>>, %arg4: memref<1x1024xi32, #tpu.memory_space<vmem>>, %arg5: memref<1x1024xf32, #tpu.memory_space<vmem>>) attributes {dimension_semantics = [#tpu.dimension_semantics<parallel>, #tpu.dimension_semantics<arbitrary>], iteration_bounds = array<i64: 1, 1>, scalar_prefetch = 0 : i64, scratch_operands = 1 : i64, tpu.core_type = #tpu.core_type<tc>, window_params = [{transform_indices = @transform_0, window_bounds = array<i64: 2, 1024>}, {transform_indices = @transform_1, window_bounds = array<i64: 1, 1024>}, {transform_indices = @transform_2, window_bounds = array<i64: 1, 1024>}]} {
    %c0_i32 = arith.constant 0 : i32
    %0 = arith.cmpi eq, %arg1, %c0_i32 : i32
    %1 = arith.extui %0 : i1 to i32
    %c0_i32_0 = arith.constant 0 : i32
    %2 = arith.cmpi ne, %1, %c0_i32_0 : i32
    scf.if %2 {
      %cst_8 = arith.constant 0.000000e+00 : f32
      %12 = vector.broadcast %cst_8 : f32 to vector<1x1024xf32>
      %c0_9 = arith.constant 0 : index
      %c0_10 = arith.constant 0 : index
      %13 = vector.load %arg5[%c0_9, %c0_10] : memref<1x1024xf32, #tpu.memory_space<vmem>>, vector<1x1024xf32>
      tpu.vector_store %arg5[%c0_9, %c0_10], %12 {strides = array<i32>} : memref<1x1024xf32, #tpu.memory_space<vmem>>, vector<1x1024xf32>,
      %c0_i32_11 = arith.constant 0 : i32
      %14 = vector.broadcast %c0_i32_11 : i32 to vector<1x1024xi32>
      %c0_12 = arith.constant 0 : index
      %c0_13 = arith.constant 0 : index
      %15 = vector.load %arg4[%c0_12, %c0_13] : memref<1x1024xi32, #tpu.memory_space<vmem>>, vector<1x1024xi32>
      tpu.vector_store %arg4[%c0_12, %c0_13], %14 {strides = array<i32>} : memref<1x1024xi32, #tpu.memory_space<vmem>>, vector<1x1024xi32>,
    } else {
    }
    %c0 = arith.constant 0 : index
    %c0_1 = arith.constant 0 : index
    %3 = vector.load %arg2[%c0, %c0_1] : memref<2x1024xf32, #tpu.memory_space<vmem>>, vector<2x1024xf32>
    %c0_2 = arith.constant 0 : index
    %c0_3 = arith.constant 0 : index
    %4 = vector.load %arg5[%c0_2, %c0_3] : memref<1x1024xf32, #tpu.memory_space<vmem>>, vector<1x1024xf32>
    %cst = arith.constant dense<0.000000e+00> : vector<1024xf32>
    %5 = vector.multi_reduction <add>, %3, %cst [0] : vector<2x1024xf32> to vector<1024xf32>
    %6 = vector.shape_cast %5 : vector<1024xf32> to vector<1x1024xf32>
    %7 = arith.addf %4, %6 : vector<1x1024xf32>
    %c0_4 = arith.constant 0 : index
    %c0_5 = arith.constant 0 : index
    %8 = vector.load %arg5[%c0_4, %c0_5] : memref<1x1024xf32, #tpu.memory_space<vmem>>, vector<1x1024xf32>
    tpu.vector_store %arg5[%c0_4, %c0_5], %7 {strides = array<i32>} : memref<1x1024xf32, #tpu.memory_space<vmem>>, vector<1x1024xf32>,
    %c0_i32_6 = arith.constant 0 : i32
    %9 = arith.cmpi eq, %arg1, %c0_i32_6 : i32
    %10 = arith.extui %9 : i1 to i32
    %c0_i32_7 = arith.constant 0 : i32
    %11 = arith.cmpi ne, %10, %c0_i32_7 : i32
    scf.if %11 {
      %c0_8 = arith.constant 0 : index
      %c0_9 = arith.constant 0 : index
      %12 = vector.load %arg5[%c0_8, %c0_9] : memref<1x1024xf32, #tpu.memory_space<vmem>>, vector<1x1024xf32>
      %cst_10 = arith.constant 5.000000e-01 : f32
      %13 = vector.broadcast %cst_10 : f32 to vector<1x1024xf32>
      %14 = arith.mulf %12, %13 : vector<1x1024xf32>
      %cst_11 = arith.constant 1.000000e+00 : f32
      %15 = vector.broadcast %cst_11 : f32 to vector<1x1024xf32>
      %16 = arith.addf %14, %15 : vector<1x1024xf32>
      %cst_12 = arith.constant 5.000000e-01 : f32
      %17 = vector.broadcast %cst_12 : f32 to vector<1x1024xf32>
      %18 = arith.mulf %16, %17 : vector<1x1024xf32>
      %c0_13 = arith.constant 0 : index
      %c0_14 = arith.constant 0 : index
      %19 = vector.load %arg3[%c0_13, %c0_14] : memref<1x1024xf32, #tpu.memory_space<vmem>>, vector<1x1024xf32>
      tpu.vector_store %arg3[%c0_13, %c0_14], %18 {strides = array<i32>} : memref<1x1024xf32, #tpu.memory_space<vmem>>, vector<1x1024xf32>,
    } else {
    }
    return
  }
  func.func @transform_0(%arg0: i32, %arg1: i32) -> (i32, i32) {
    %c0_i32 = arith.constant 0 : i32
    return %arg1, %arg0 : i32, i32
  }
  func.func @transform_1(%arg0: i32, %arg1: i32) -> (i32, i32) {
    %c0_i32 = arith.constant 0 : i32
    %c0_i32_0 = arith.constant 0 : i32
    return %c0_i32, %arg0 : i32, i32
  }
  func.func @transform_2(%arg0: i32, %arg1: i32) -> (i32, i32) {
    %c0_i32 = arith.constant 0 : i32
    %c0_i32_0 = arith.constant 0 : i32
    return %c0_i32, %arg0 : i32, i32
  }
}

</mosaic_0001>

<bundles_post_ra>
// kernel: tpu_custom_call.1
= control target key start
LH: loop header
LB: loop body
LE: loop exit
PB: predicated region body
PF: predicated region fallthrough
CT: control target
= control target key end

     0   :  { %8 = vsyncpa [#allocation4], 0  ;;  %s384_s0 = inlined_call_operand.hbm [shape: f32[2,1024], index: 0, kind: input, shape index: {}]   ;;  %s385_s1 = inlined_call_operand.hbm [shape: f32[1,1024], index: 1, kind: output, shape index: {0}]   ;;  %s386_s2 = inlined_call_operand.hbm [shape: s32[1,1024], index: 2, kind: output, shape index: {1}]  }
   0x1   :  { %9 = vsyncpa [#allocation5], 0 }
   0x2   :  { %10 = vsyncpa [#allocation8], 0  ;;  %s311_s9 = smov [#allocation3]   ;;  %s239_s13 = scalar_lea.hbm %s384_s0, 256 }
   0x3   :  { %s17_s10 = sshll.u32 %s311_s9, 4  ;;  %p240_p0 = scmp.ne.s32.totalorder %s384_s0, %s239_s13  ;;  %s18_s10 = int_to_ptr.vmem [resolvable:$true] %s17_s10 }
   0x4   :  { %p243_p1 = scmp.lt.u32.totalorder %s239_s13, %s384_s0 }
   0x6   :  { %p245_p2 = pnand %p243_p1, %p240_p0 }
   0x8   :  { %248 = shalt.err (!%p245_p2)
}
   0x9   :  { %s249_s18 = scalar_lea.vmem %s18_s10, 256  ;;  %p254_p4 = scmp.lt.s32.totalorder %s18_s10, %s18_s10 }
   0xa   :  { %p250_p3 = scmp.ne.s32.totalorder %s18_s10, %s249_s18  ;;  %p255_p5 = scmp.lt.s32.totalorder %s249_s18, %s249_s18 }
   0xc   :  { %p256_p6 = por %p255_p5, %p254_p4 }
   0xe   :  { %p257_p7 = pnand %p256_p6, %p250_p3 }
  0x10   :  { %260 = shalt.err (!%p257_p7)
}
  0x11   :  { %20 = dma.hbm_to_vmem [thread:$0]  %s384_s0, 256, %s18_s10, [#allocation4]  }
  0x12   :  { %305 = dma.done.wait [#allocation4], 256  }
  0x13   :  { %306 = vsyncadd [#allocation4], 4294967040  ;;  %v39_v0 = vlaneseq  ;;  %v312_v1 = vmov 0   ;;  %v313_v2 = vmov 1983009808   ;;  %s314_s21 = smov [#allocation7]  }
  0x14   :  { %29 = vst [vmem:[#allocation7] sm:$0xff] %v312_v1  ;;  %v37_v3 = vunpack.c.l.s4 %v313_v2  ;;  %s218_s22 = sshll.u32 %s314_s21, 4  ;;  %v315_v6 = vmov 1966171168   ;;  %s219_s22 = int_to_ptr.vmem [resolvable:$true] %s218_s22 }
  0x15   :  { %v40_v4 = vshrl.u32 %v39_v0, 7  ;;  %v147_v7 = vunpack.c.l.s4 %v315_v6  ;;  %s261_s23 = scalar_lea.vmem %s219_s22, 128  ;;  %p266_p9 = scmp.lt.s32.totalorder %s219_s22, %s219_s22 }
  0x16   :  { %v38_v5 = vunpack.c.0.s8 %v37_v3  ;;  %p262_p8 = scmp.ne.s32.totalorder %s219_s22, %s261_s23  ;;  %p267_p10 = scmp.lt.s32.totalorder %s261_s23, %s261_s23 }
  0x18   :  { %p268_p11 = por %p267_p10, %p266_p9 }
  0x1a   :  { %p269_p12 = pnand %p268_p11, %p262_p8 }
  0x1c   :  { %272 = shalt.err (!%p269_p12)
}
  0x1d   :  { %s273_s25 = scalar_lea.hbm %s386_s2, 128 }
  0x1e   :  { %p274_p13 = scmp.ne.s32.totalorder %s386_s2, %s273_s25  ;;  %p277_p0 = scmp.lt.u32.totalorder %s273_s25, %s386_s2 }
  0x20   :  { %p279_p1 = pnand %p277_p0, %p274_p13 }
  0x22   :  { %282 = shalt.err (!%p279_p1)
}
  0x23   :  { %221 = dma.vmem_to_hbm [thread:$0]  %s219_s22, 128, %s386_s2, [#allocation8]   ;;  %v41_v8 = vsub.s32 %v38_v5, %v40_v4  ;;  %v30_v9 = vld [vmem:[#allocation3] sm:$0xff]  ;;  %v31_v10 = vld [vmem:[#allocation3 + $0x8] sm:$0xff]  ;;  %vm77_vm0 = vcmask 1041408   ;;  %v148_v11 = vunpack.c.0.s8 %v147_v7 }
  0x24   :  { %v35_v12 = vcombine.high %v30_v9, %v30_v9  ;;  %v52_v14 = vcombine.high %v31_v10, %v31_v10  ;;  %s316_s2 = smov [#allocation6]  }
  0x25   :  { %v42_v13 = vrot.slane %v30_v9, %v41_v8  ;;  %v59_v15 = vrot.slane %v31_v10, %v41_v8  ;;  %v358_v22 = vsub.s32 %v148_v11, %v40_v4  ;;  %s208_s4 = sshll.u32 %s316_s2, 4  ;;  %s209_s4 = int_to_ptr.vmem [resolvable:$true] %s208_s4 }
  0x26   :  { %v49_v16 = vrot.slane %v35_v12, %v41_v8  ;;  %v66_v18 = vrot.slane %v52_v14, %v41_v8  ;;  %s283_s5 = scalar_lea.vmem %s209_s4, 128  ;;  %p288_p3 = scmp.lt.s32.totalorder %s209_s4, %s209_s4 }
  0x27   :  { %v50_v17 = vcombine.high %v42_v13, %v42_v13  ;;  %v67_v19 = vcombine.high %v59_v15, %v59_v15  ;;  %v78_v20 = vsel %vm77_vm0, %v42_v13, 0.0  ;;  %v106_v21 = vsel %vm77_vm0, %v59_v15, 0.0  ;;  %p284_p2 = scmp.ne.s32.totalorder %s209_s4, %s283_s5  ;;  %p289_p4 = scmp.lt.s32.totalorder %s283_s5, %s283_s5 }
  0x28   :  { %v51_v23 = vcombine.high %v49_v16, %v49_v16  ;;  %v68_v24 = vcombine.high %v66_v18, %v66_v18  ;;  %v79_v25 = vrot.slane %v78_v20, 4  ;;  %v92_v28 = vsel %vm77_vm0, %v49_v16, 0.0 }
  0x29   :  { %v85_v26 = vsel %vm77_vm0, %v50_v17, 0.0  ;;  %v107_v29 = vrot.slane %v106_v21, 4  ;;  %v113_v30 = vsel %vm77_vm0, %v67_v19, 0.0  ;;  %v93_v32 = vrot.slane %v92_v28, 4  ;;  %p290_p5 = por %p289_p4, %p288_p3 }
  0x2a   :  { %v86_v27 = vrot.slane %v85_v26, 4  ;;  %v80_v31 = vadd.f32 %v79_v25, %v78_v20  ;;  %v99_v33 = vsel %vm77_vm0, %v51_v23, 0.0  ;;  %v114_v34 = vrot.slane %v113_v30, 4 }
  0x2b   :  { %v100_v36 = vrot.slane %v99_v33, 4  ;;  %v108_v37 = vadd.f32 %v107_v29, %v106_v21  ;;  %v120_v38 = vsel %vm77_vm0, %v66_v18, 0.0  ;;  %v94_v40 = vadd.f32 %v93_v32, %v92_v28  ;;  %p291_p6 = pnand %p290_p5, %p284_p2 }
  0x2c   :  { %v87_v35 = vadd.f32 %v86_v27, %v85_v26  ;;  %v81_v39 = vrot.slane %v80_v31, 2  ;;  %v115_v41 = vadd.f32 %v114_v34, %v113_v30  ;;  %v121_v42 = vrot.slane %v120_v38, 4 }
  0x2d   :  { %v101_v44 = vadd.f32 %v100_v36, %v99_v33  ;;  %v109_v45 = vrot.slane %v108_v37, 2  ;;  %v127_v46 = vsel %vm77_vm0, %v68_v24, 0.0  ;;  %v95_v48 = vrot.slane %v94_v40, 2 }
  0x2e   :  { %v88_v43 = vrot.slane %v87_v35, 2  ;;  %v82_v47 = vadd.f32 %v81_v39, %v80_v31  ;;  %v116_v49 = vrot.slane %v115_v41, 2  ;;  %v122_v50 = vadd.f32 %v121_v42, %v120_v38 }
  0x2f   :  { %v102_v52 = vrot.slane %v101_v44, 2  ;;  %v110_v53 = vadd.f32 %v109_v45, %v108_v37  ;;  %v128_v54 = vrot.slane %v127_v46, 4  ;;  %v96_v56 = vadd.f32 %v95_v48, %v94_v40 }
  0x30   :  { %v89_v51 = vadd.f32 %v88_v43, %v87_v35  ;;  %v83_v55 = vrot.slane %v82_v47, 1  ;;  %v117_v57 = vadd.f32 %v116_v49, %v115_v41  ;;  %v123_v58 = vrot.slane %v122_v50, 2 }
  0x31   :  { %v103_v60 = vadd.f32 %v102_v52, %v101_v44  ;;  %v111_v61 = vrot.slane %v110_v53, 1  ;;  %v129_v62 = vadd.f32 %v128_v54, %v127_v46  ;;  %v97_v0 = vrot.slane %v96_v56, 1 }
  0x32   :  { %v90_v59 = vrot.slane %v89_v51, 1  ;;  %v84_v63 = vadd.f32 %v83_v55, %v82_v47  ;;  %v118_v1 = vrot.slane %v117_v57, 1  ;;  %v124_v2 = vadd.f32 %v123_v58, %v122_v50 }
  0x33   :  { %v104_v4 = vrot.slane %v103_v60, 1  ;;  %v112_v5 = vadd.f32 %v111_v61, %v110_v53  ;;  %v130_v6 = vrot.slane %v129_v62, 2  ;;  %v98_v7 = vadd.f32 %v97_v0, %v96_v56 }
  0x34   :  { %v91_v3 = vadd.f32 %v90_v59, %v89_v51  ;;  %v119_v8 = vadd.f32 %v118_v1, %v117_v57  ;;  %v125_v9 = vrot.slane %v124_v2, 1 }
  0x35   :  { %v105_v10 = vadd.f32 %v104_v4, %v103_v60  ;;  %v131_v11 = vadd.f32 %v130_v6, %v129_v62 }
  0x36   :  { %v142_v12 = vcombine.low %v84_v63, %v91_v3  ;;  %v126_v13 = vadd.f32 %v125_v9, %v124_v2  ;;  %v144_v16 = vcombine.low %v112_v5, %v119_v8 }
  0x37   :  { %v132_v14 = vrot.slane %v131_v11, 1  ;;  %v143_v15 = vcombine.low %v98_v7, %v105_v10 }
  0x38   :  { %v152_v17 = vrot.slane %v142_v12, %v358_v22  ;;  %v166_v21 = vrot.slane %v144_v16, %v358_v22 }
  0x39   :  { %v133_v18 = vadd.f32 %v132_v14, %v131_v11  ;;  %v159_v19 = vrot.slane %v143_v15, %v358_v22 }
  0x3b   :  { %v145_v20 = vcombine.low %v126_v13, %v133_v18  ;;  %v174_v23 = vcombine.low %v152_v17, %v159_v19 }
  0x3d   :  { %v173_v24 = vrot.slane %v145_v20, %v358_v22  ;;  %v182_v26 = vrot.slane %v174_v23, %v358_v22 }
  0x3f   :  { %v175_v25 = vcombine.low %v166_v21, %v173_v24 }
  0x41   :  { %v189_v27 = vrot.slane %v175_v25, %v358_v22 }
  0x43   :  { %v190_v28 = vcombine.low %v182_v26, %v189_v27 }
  0x45   :  { %v198_v29 = vmul.f32 0.5, %v190_v28 }
  0x47   :  { %v199_v30 = vadd.f32 1.0, %v198_v29 }
  0x49   :  { %v200_v31 = vmul.f32 0.5, %v199_v30 }
  0x4b   :  { %201 = vst [vmem:[#allocation6] sm:$0xff] %v200_v31 }
  0x4c   :  { %294 = shalt.err (!%p291_p6)
}
  0x4d   :  { %s295_s8 = scalar_lea.hbm %s385_s1, 128 }
  0x4e   :  { %p296_p7 = scmp.ne.s32.totalorder %s385_s1, %s295_s8  ;;  %p299_p8 = scmp.lt.u32.totalorder %s295_s8, %s385_s1 }
  0x50   :  { %p301_p9 = pnand %p299_p8, %p296_p7 }
  0x52   :  { %304 = shalt.err (!%p301_p9)
}
  0x53   :  { %211 = dma.vmem_to_hbm [thread:$0]  %s209_s4, 128, %s385_s1, [#allocation5]  }
  0x54   :  { %307 = dma.done.wait [#allocation5], 128  }
  0x55   :  { %308 = vsyncadd [#allocation5], 4294967168 }
  0x56   :  { %309 = dma.done.wait [#allocation8], 128  }
  0x57   :  { %310 = vsyncadd [#allocation8], 4294967168 }
  0x58   :  { %228 = vsyncpa [#allocation4], 1 }
  0x59   :  { %229 = vsyncpa [#allocation5], 1 }
  0x5a   :  { %230 = vsyncpa [#allocation8], 1 }

</bundles_post_ra>
